<compile_context>
chip_gen: v7x
topology: tpu7x:2x2x1
jax: 0.10.0
libtpu: 0.0.40
codegen_flags: <defaults>
</compile_context>

<pallas_src>
import functools

import jax
import jax.numpy as jnp
from jax.experimental import pallas as pl
from jax.experimental.pallas import tpu as pltpu

LANE = 128


def _round_up(a, b):
    return ((a + b - 1) // b) * b


def _device_kind():
    try:
        return jax.devices()[0].device_kind.lower()
    except Exception:
        return ""


def _sublane(itemsize):
    # (8,128) for 4-byte, (16,128) for 2-byte, (32,128) for 1-byte dtypes.
    return {1: 32, 2: 16}.get(itemsize, 8)


def _default_max_tile_rows(itemsize):
    # ~2 MiB blocks on the v5 family (16 MiB scoped-VMEM default), ~4 MiB on
    # v6e / v7x (32 MiB scoped default).  3 operands x 2 pipeline buffers x
    # block stays inside the scoped default on every generation with headroom.
    target_bytes = (2 << 20) if "v5" in _device_kind() else (4 << 20)
    rows = target_bytes // (LANE * itemsize)
    sl = _sublane(itemsize)
    return max(sl, (rows // sl) * sl)


def _vmem_limit(block_bytes):
    # 3 specs x 2 buffers x block + headroom; clamp to sane bounds (<= v7x).
    return int(min(max(6 * block_bytes + (4 << 20), 16 << 20), 48 << 20))


# ---------------------------------------------------------------------------
# Kernels
# ---------------------------------------------------------------------------

def _anl_fused_kernel(gauss_ref, x_ref, g_ref, o_ref, *, n_total, lowp_apply):
    """Whole tensor resident in VMEM: reduce + finalize + apply in one pass."""
    xf = x_ref[...].astype(jnp.float32)
    gf = g_ref[...].astype(jnp.float32)
    s = jnp.sum(xf)
    ss = jnp.sum(xf * xf)
    gmax = jnp.max(jnp.abs(gf))
    mean = s * (1.0 / n_total)
    # Unbiased variance from the fused sum / sum-of-squares sweep.  (n==1 is
    # clamped to avoid a 0-division; torch would return NaN there.)
    var = jnp.maximum(ss - s * mean, 0.0) * (1.0 / max(n_total - 1, 1))
    # All-zero grad -> inf/NaN scale, matching PyTorch (documented).
    scale = gauss_ref[0] * jnp.sqrt(var) / gmax
    if lowp_apply:
        out = x_ref[...] + scale.astype(o_ref.dtype) * g_ref[...].astype(o_ref.dtype)
    else:
        out = xf + scale * gf
    o_ref[...] = out.astype(o_ref.dtype)


def _anl_reduce_kernel(x_ref, g_ref, sum_ref, ssq_ref, amax_ref,
                       *, tile_rows, rows, ragged):
    """Per-tile lane-parallel partials: (8,128) sum, sum-of-squares, max|g|."""
    xf = x_ref[...].astype(jnp.float32)
    ga = jnp.abs(g_ref[...].astype(jnp.float32))
    if ragged:
        # Last tile overhangs the (rows, 128) slab: mask the garbage rows.
        local_row = jax.lax.broadcasted_iota(jnp.int32, (tile_rows, LANE), 0)
        valid = (pl.program_id(0) * tile_rows + local_row) < rows
        xf = jnp.where(valid, xf, 0.0)
        ga = jnp.where(valid, ga, 0.0)
    groups = tile_rows // 8
    xg = xf.reshape(groups, 8, LANE)        # (8,128)-aligned, no tile crossing
    gg = ga.reshape(groups, 8, LANE)
    # Elementwise (VPU-only) accumulation across vregs; the single cross-lane
    # reduce happens once, in the tiny XLA finalize outside the kernel.
    sum_ref[...] = jnp.sum(xg, axis=0)[None]
    ssq_ref[...] = jnp.sum(xg * xg, axis=0)[None]
    amax_ref[...] = jnp.max(gg, axis=0)[None]


def _anl_apply_kernel(scale_ref, x_ref, g_ref, o_ref, *, lowp_apply):
    """out = x + scale * grad (one mul + one add per element, lane-dense)."""
    if lowp_apply:
        out = x_ref[...] + scale_ref[0].astype(o_ref.dtype) * g_ref[...].astype(o_ref.dtype)
    else:
        out = x_ref[...].astype(jnp.float32) + scale_ref[0] * g_ref[...].astype(jnp.float32)
    o_ref[...] = out.astype(o_ref.dtype)


# ---------------------------------------------------------------------------
# Wrapper
# ---------------------------------------------------------------------------

def anl_forward(x, grad, key, factor=0.02, *, max_tile_rows=None, donate_x=False):
    """ANL forward. x, grad: same-shape arrays (e.g. NCHW activations)."""
    if factor is None:
        return x

    dtype = x.dtype
    shape = x.shape
    n_total = x.size
    itemsize = jnp.dtype(dtype).itemsize
    sublane = _sublane(itemsize)

    # gaussian scalar ~ Normal(factor/2, factor/4), clamped to [0, factor].
    sample = factor / 2.0 + (factor / 4.0) * jax.random.normal(key, (), jnp.float32)
    gauss_arr = jnp.clip(sample, 0.0, factor).reshape(1).astype(jnp.float32)

    if max_tile_rows is None:
        max_tile_rows = _default_max_tile_rows(itemsize)
    max_tile_rows = max(sublane, _round_up(int(max_tile_rows), sublane))

    # bf16 apply on v6e/v7x (bf16 VPU); keep the f32 upcast on the v5 family.
    lowp_apply = (dtype == jnp.bfloat16) and ("v5" not in _device_kind())

    rows = -(-n_total // LANE)
    pad_elems = rows * LANE - n_total
    xf = x.reshape(-1)
    gf = grad.reshape(-1)
    if pad_elems:
        # Lane-ragged fallback only (n_total % 128 != 0): minimal pad to 128.
        xf = jnp.pad(xf, (0, pad_elems))
        gf = jnp.pad(gf, (0, pad_elems))
    x2 = xf.reshape(rows, LANE)   # free bitcast when pad_elems == 0
    g2 = gf.reshape(rows, LANE)

    io_alias = {1: 0} if donate_x else {}

    if rows <= max_tile_rows:
        # --- single-block resident fast path: x/grad read from HBM once -----
        kernel = functools.partial(_anl_fused_kernel, n_total=n_total,
                                   lowp_apply=lowp_apply)
        out2 = pl.pallas_call(
            kernel,
            out_shape=jax.ShapeDtypeStruct((rows, LANE), dtype),
            grid=(1,),
            in_specs=[
                pl.BlockSpec(memory_space=pltpu.MemorySpace.SMEM),   # gaussian
                pl.BlockSpec((rows, LANE), lambda i: (0, 0)),        # x slab
                pl.BlockSpec((rows, LANE), lambda i: (0, 0)),        # grad slab
            ],
            out_specs=pl.BlockSpec((rows, LANE), lambda i: (0, 0)),
            input_output_aliases=io_alias,
            compiler_params=pltpu.CompilerParams(
                dimension_semantics=("arbitrary",),
                vmem_limit_bytes=_vmem_limit(rows * LANE * itemsize)),
        )(gauss_arr, x2, g2)
    else:
        # --- tiled path: parallel reduce + tiny finalize + parallel apply ----
        n_tiles = -(-rows // max_tile_rows)
        tile_rows = _round_up(-(-rows // n_tiles), sublane)   # balanced tiles
        n_tiles = -(-rows // tile_rows)
        ragged = (rows % tile_rows) != 0
        vmem_limit = _vmem_limit(tile_rows * LANE * itemsize)

        red_kernel = functools.partial(_anl_reduce_kernel, tile_rows=tile_rows,
                                       rows=rows, ragged=ragged)
        part_shape = jax.ShapeDtypeStruct((n_tiles, 8, LANE), jnp.float32)
        psum, pssq, pmax = pl.pallas_call(
            red_kernel,
            out_shape=(part_shape, part_shape, part_shape),
            grid=(n_tiles,),
            in_specs=[
                pl.BlockSpec((tile_rows, LANE), lambda t: (t, 0)),
                pl.BlockSpec((tile_rows, LANE), lambda t: (t, 0)),
            ],
            out_specs=(
                pl.BlockSpec((1, 8, LANE), lambda t: (t, 0, 0)),
                pl.BlockSpec((1, 8, LANE), lambda t: (t, 0, 0)),
                pl.BlockSpec((1, 8, LANE), lambda t: (t, 0, 0)),
            ),
            compiler_params=pltpu.CompilerParams(
                dimension_semantics=("parallel",),      # v7x: both TensorCores
                vmem_limit_bytes=vmem_limit),
        )(x2, g2)

        # Tiny scalar finalize in XLA (single cross-lane reduce of partials).
        s = jnp.sum(psum)
        ss = jnp.sum(pssq)
        gmax = jnp.max(pmax)
        mean = s / n_total
        var = jnp.maximum(ss - s * mean, 0.0) / max(n_total - 1, 1)
        scale = (gauss_arr[0] * jnp.sqrt(var) / gmax).reshape(1).astype(jnp.float32)

        app_kernel = functools.partial(_anl_apply_kernel, lowp_apply=lowp_apply)
        out2 = pl.pallas_call(
            app_kernel,
            out_shape=jax.ShapeDtypeStruct((rows, LANE), dtype),
            grid=(n_tiles,),
            in_specs=[
                pl.BlockSpec(memory_space=pltpu.MemorySpace.SMEM),   # scale
                pl.BlockSpec((tile_rows, LANE), lambda t: (t, 0)),
                pl.BlockSpec((tile_rows, LANE), lambda t: (t, 0)),
            ],
            out_specs=pl.BlockSpec((tile_rows, LANE), lambda t: (t, 0)),
            input_output_aliases=io_alias,
            compiler_params=pltpu.CompilerParams(
                dimension_semantics=("parallel",),      # v7x: both TensorCores
                vmem_limit_bytes=vmem_limit),
        )(scale, x2, g2)

    out = out2
    if pad_elems:
        out = out2.reshape(-1)[:n_total]
    return out.reshape(shape)


def anl_reference(x, grad, gaussian):
    """Pure-JAX reference mirroring the PyTorch forward."""
    n = x.size
    xf = x.astype(jnp.float32)
    gf = grad.astype(jnp.float32)
    mean = jnp.mean(xf)
    std = jnp.sqrt(jnp.sum((xf - mean) ** 2) / (n - 1))
    inf_norm = jnp.max(jnp.abs(gf))
    noise = gaussian * std * gf / inf_norm
    return (xf + noise).astype(x.dtype)


if __name__ == "__main__":
    key = jax.random.PRNGKey(0)
    kx, kg, kn, kx2, kg2 = jax.random.split(key, 5)

    factor = 0.02

    # Small NCHW activation consistent with the module's usage.
    x = jax.random.normal(kx, (2, 4, 16, 16), jnp.float32)
    # x.grad in PyTorch is an externally-attached gradient; synthesize one.
    grad = jax.random.normal(kg, (2, 4, 16, 16), jnp.float32)

    # Same gaussian scalar the kernel derives from `kn`.
    sample = factor / 2.0 + (factor / 4.0) * jax.random.normal(kn, (), jnp.float32)
    gaussian = jnp.clip(sample, 0.0, factor)
    ref = anl_reference(x, grad, gaussian)

    # 1) Default path: fits one block -> fused single-read resident kernel.
    out = jax.block_until_ready(anl_forward(x, grad, kn, factor=factor))
    assert out.shape == x.shape and out.dtype == x.dtype
    assert jnp.allclose(out, ref, atol=1e-5, rtol=1e-5)

    # 2) Force the tiled parallel reduce+apply path (rows=16, tile_rows=8).
    out_tiled = jax.block_until_ready(
        anl_forward(x, grad, kn, factor=factor, max_tile_rows=8))
    assert jnp.allclose(out_tiled, ref, atol=1e-5, rtol=1e-5)

    # 3) Ragged rows (rows=20, tile_rows=8) -> masked last reduce tile.
    xr = jax.random.normal(kx2, (2, 4, 20, 16), jnp.float32)
    gr = jax.random.normal(kg2, (2, 4, 20, 16), jnp.float32)
    out_r = jax.block_until_ready(
        anl_forward(xr, gr, kn, factor=factor, max_tile_rows=8))
    assert jnp.allclose(out_r, anl_reference(xr, gr, gaussian), atol=1e-5, rtol=1e-5)

    # 4) Lane-ragged element count (945) -> minimal pad-to-128 fallback.
    xs = jax.random.normal(kx2, (3, 5, 7, 9), jnp.float32)
    gs = jax.random.normal(kg2, (3, 5, 7, 9), jnp.float32)
    out_s = jax.block_until_ready(anl_forward(xs, gs, kn, factor=factor))
    assert jnp.allclose(out_s, anl_reference(xs, gs, gaussian), atol=1e-5, rtol=1e-5)

    # 5) factor=None path: identity.
    assert jnp.array_equal(anl_forward(x, grad, kn, factor=None), x)

    print("KERNEL_OK")
</pallas_src>

<mosaic_0001>
module attributes {stable_mosaic.version = 11 : i64} {
  func.func @_anl_fused_kernel(%arg0: i32, %arg1: memref<1xf32, #tpu.memory_space<smem>>, %arg2: memref<16x128xf32, #tpu.memory_space<vmem>>, %arg3: memref<16x128xf32, #tpu.memory_space<vmem>>, %arg4: memref<16x128xf32, #tpu.memory_space<vmem>>) attributes {dimension_semantics = [#tpu.dimension_semantics<arbitrary>], iteration_bounds = array<i64: 1>, scalar_prefetch = 0 : i64, scratch_operands = 0 : i64, tpu.core_type = #tpu.core_type<tc>, window_params = [{transform_indices = @transform_0, window_bounds = array<i64: 1>}, {pipeline_mode = #tpu.pipeline_mode<synchronous>, transform_indices = @transform_1, window_bounds = array<i64: 16, 128>}, {pipeline_mode = #tpu.pipeline_mode<synchronous>, transform_indices = @transform_2, window_bounds = array<i64: 16, 128>}, {pipeline_mode = #tpu.pipeline_mode<synchronous>, transform_indices = @transform_3, window_bounds = array<i64: 16, 128>}]} {
    %c0 = arith.constant 0 : index
    %c0_0 = arith.constant 0 : index
    %0 = vector.load %arg2[%c0, %c0_0] : memref<16x128xf32, #tpu.memory_space<vmem>>, vector<16x128xf32>
    %c0_1 = arith.constant 0 : index
    %c0_2 = arith.constant 0 : index
    %1 = vector.load %arg3[%c0_1, %c0_2] : memref<16x128xf32, #tpu.memory_space<vmem>>, vector<16x128xf32>
    %2 = vector.shape_cast %0 : vector<16x128xf32> to vector<1x16x128xf32>
    %cst = arith.constant dense<0.000000e+00> : vector<1xf32>
    %3 = vector.multi_reduction <add>, %2, %cst [1, 2] : vector<1x16x128xf32> to vector<1xf32>
    %4 = vector.shape_cast %3 : vector<1xf32> to vector<1x1x1xf32>
    %5 = vector.extract %4[0, 0, 0] : f32 from vector<1x1x1xf32>
    %6 = arith.mulf %0, %0 : vector<16x128xf32>
    %7 = vector.shape_cast %6 : vector<16x128xf32> to vector<1x16x128xf32>
    %cst_3 = arith.constant dense<0.000000e+00> : vector<1xf32>
    %8 = vector.multi_reduction <add>, %7, %cst_3 [1, 2] : vector<1x16x128xf32> to vector<1xf32>
    %9 = vector.shape_cast %8 : vector<1xf32> to vector<1x1x1xf32>
    %10 = vector.extract %9[0, 0, 0] : f32 from vector<1x1x1xf32>
    %11 = math.absf %1 : vector<16x128xf32>
    %12 = vector.shape_cast %11 : vector<16x128xf32> to vector<1x16x128xf32>
    %cst_4 = arith.constant dense<0xFF800000> : vector<1xf32>
    %13 = vector.multi_reduction <maximumf>, %12, %cst_4 [1, 2] : vector<1x16x128xf32> to vector<1xf32>
    %14 = vector.shape_cast %13 : vector<1xf32> to vector<1x1x1xf32>
    %15 = vector.extract %14[0, 0, 0] : f32 from vector<1x1x1xf32>
    %cst_5 = arith.constant 4.8828125E-4 : f32
    %16 = arith.mulf %5, %cst_5 : f32
    %17 = arith.mulf %5, %16 : f32
    %18 = arith.subf %10, %17 : f32
    %cst_6 = arith.constant 0.000000e+00 : f32
    %19 = arith.maximumf %18, %cst_6 : f32
    %cst_7 = arith.constant 4.88519785E-4 : f32
    %20 = arith.mulf %19, %cst_7 : f32
    %c0_8 = arith.constant 0 : index
    %21 = memref.load %arg1[%c0_8] : memref<1xf32, #tpu.memory_space<smem>>
    %22 = math.sqrt %20 : f32
    %23 = arith.mulf %21, %22 : f32
    %24 = arith.divf %23, %15 : f32
    %25 = vector.broadcast %24 : f32 to vector<16x128xf32>
    %26 = arith.mulf %25, %1 : vector<16x128xf32>
    %27 = arith.addf %0, %26 : vector<16x128xf32>
    %c0_9 = arith.constant 0 : index
    %c0_10 = arith.constant 0 : index
    %28 = vector.load %arg4[%c0_9, %c0_10] : memref<16x128xf32, #tpu.memory_space<vmem>>, vector<16x128xf32>
    tpu.vector_store %arg4[%c0_9, %c0_10], %27 {strides = array<i32>} : memref<16x128xf32, #tpu.memory_space<vmem>>, vector<16x128xf32>,
    return
  }
  func.func @transform_0(%arg0: i32) -> i32 {
    %c0_i32 = arith.constant 0 : i32
    %c0_i32_0 = arith.constant 0 : i32
    return %c0_i32 : i32
  }
  func.func @transform_1(%arg0: i32) -> (i32, i32) {
    %c0_i32 = arith.constant 0 : i32
    %c0_i32_0 = arith.constant 0 : i32
    %c0_i32_1 = arith.constant 0 : i32
    return %c0_i32, %c0_i32_0 : i32, i32
  }
  func.func @transform_2(%arg0: i32) -> (i32, i32) {
    %c0_i32 = arith.constant 0 : i32
    %c0_i32_0 = arith.constant 0 : i32
    %c0_i32_1 = arith.constant 0 : i32
    return %c0_i32, %c0_i32_0 : i32, i32
  }
  func.func @transform_3(%arg0: i32) -> (i32, i32) {
    %c0_i32 = arith.constant 0 : i32
    %c0_i32_0 = arith.constant 0 : i32
    %c0_i32_1 = arith.constant 0 : i32
    return %c0_i32, %c0_i32_0 : i32, i32
  }
}

</mosaic_0001>

<bundles_post_ra>
// kernel: tpu_custom_call.1
= control target key start
LH: loop header
LB: loop body
LE: loop exit
PB: predicated region body
PF: predicated region fallthrough
CT: control target
= control target key end

     0   :  { %9 = vsyncpa [#allocation4], 0  ;;  %s313_s0 = inlined_call_operand.<no memory space> [shape: f32[1], index: 0, kind: input, shape index: {}]   ;;  %s314_s1 = inlined_call_operand.hbm [shape: f32[16,128], index: 1, kind: input, shape index: {}]   ;;  %s315_s2 = inlined_call_operand.hbm [shape: f32[16,128], index: 2, kind: input, shape index: {}]   ;;  %s316_s3 = inlined_call_operand.hbm [shape: f32[16,128], index: 3, kind: output, shape index: {}]  }
   0x1   :  { %10 = vsyncpa [#allocation7], 0 }
   0x2   :  { %11 = vsyncpa [#allocation5], 0  ;;  %s219_s12 = smov [#allocation3]   ;;  %s147_s16 = scalar_lea.hbm %s314_s1, 256 }
   0x3   :  { %s19_s13 = sshll.u32 %s219_s12, 4  ;;  %p148_p0 = scmp.ne.s32.totalorder %s314_s1, %s147_s16  ;;  %s20_s13 = int_to_ptr.vmem [resolvable:$true] %s19_s13 }
   0x4   :  { %p151_p1 = scmp.lt.u32.totalorder %s147_s16, %s314_s1 }
   0x6   :  { %p153_p2 = pnand %p151_p1, %p148_p0 }
   0x8   :  { %156 = shalt.err (!%p153_p2)
}
   0x9   :  { %s157_s21 = scalar_lea.vmem %s20_s13, 256  ;;  %p162_p4 = scmp.lt.s32.totalorder %s20_s13, %s20_s13 }
   0xa   :  { %p158_p3 = scmp.ne.s32.totalorder %s20_s13, %s157_s21  ;;  %p163_p5 = scmp.lt.s32.totalorder %s157_s21, %s157_s21 }
   0xc   :  { %p164_p6 = por %p163_p5, %p162_p4 }
   0xe   :  { %p165_p7 = pnand %p164_p6, %p158_p3 }
  0x10   :  { %168 = shalt.err (!%p165_p7)
}
  0x11   :  { %s220_s22 = smov 128   ;;  %s221_s23 = smov 8  }
  0x12   :  { %25 = dma.hbm_to_vmem [thread:$0]  %s314_s1, 256, %s20_s13, [#allocation4], %s220_s22, %s220_s22, %s221_s23  }
  0x13   :  { %s222_s26 = smov [#allocation6]   ;;  %s169_s30 = scalar_lea.hbm %s315_s2, 256 }
  0x14   :  { %s31_s27 = sshll.u32 %s222_s26, 4  ;;  %p170_p8 = scmp.ne.s32.totalorder %s315_s2, %s169_s30  ;;  %s32_s27 = int_to_ptr.vmem [resolvable:$true] %s31_s27 }
  0x15   :  { %p173_p9 = scmp.lt.u32.totalorder %s169_s30, %s315_s2 }
  0x17   :  { %p175_p10 = pnand %p173_p9, %p170_p8 }
  0x19   :  { %178 = shalt.err (!%p175_p10)
}
  0x1a   :  { %s179_s8 = scalar_lea.vmem %s32_s27, 256  ;;  %p184_p12 = scmp.lt.s32.totalorder %s32_s27, %s32_s27 }
  0x1b   :  { %p180_p11 = scmp.ne.s32.totalorder %s32_s27, %s179_s8  ;;  %p185_p13 = scmp.lt.s32.totalorder %s179_s8, %s179_s8 }
  0x1d   :  { %p186_p0 = por %p185_p13, %p184_p12 }
  0x1f   :  { %p187_p1 = pnand %p186_p0, %p180_p11 }
  0x21   :  { %190 = shalt.err (!%p187_p1)
}
  0x22   :  { %37 = dma.hbm_to_vmem [thread:$0]  %s315_s2, 256, %s32_s27, [#allocation7], %s220_s22, %s220_s22, %s221_s23  }
  0x23   :  { %213 = dma.done.wait [#allocation4], 256  }
  0x24   :  { %214 = vsyncadd [#allocation4], 4294967040 }
  0x25   :  { %215 = dma.done.wait [#allocation7], 256  }
  0x26   :  { %216 = vsyncadd [#allocation7], 4294967040  ;;  %v275_v0 = vld [vmem:[#allocation3] sm:$0xff]  ;;  %v277_v1 = vld [vmem:[#allocation3 + $0x8] sm:$0xff]  ;;  %s223_s14 = smov 0.0   ;;  %s224_s26 = smov [#allocation8]  }
  0x27   :  { %v279_v2 = vld [vmem:[#allocation6] sm:$0xff]  ;;  %v48_v3 = vadd.f32 %v277_v1, %v275_v0  ;;  %v58_v4 = vmul.f32 %v275_v0, %v275_v0  ;;  %v59_v5 = vmul.f32 %v277_v1, %v277_v1  ;;  %v287_v6 = vld [vmem:[#allocation6 + $0x8] sm:$0xff]  ;;  %s114_s27 = sshll.u32 %s224_s26, 4  ;;  %s115_s27 = int_to_ptr.vmem [resolvable:$true] %s114_s27 }
  0x28   :  { %v70_v7 = vand.u32 2147483647, %v279_v2  ;;  %v71_v8 = vand.u32 2147483647, %v287_v6  ;;  %s191_s28 = scalar_lea.vmem %s115_s27, 256  ;;  %p196_p3 = scmp.lt.s32.totalorder %s115_s27, %s115_s27 }
  0x29   :  { %49 = vadd.xlane.f32.xlu0 %v48_v3  ;;  %v60_v9 = vadd.f32 %v59_v5, %v58_v4  ;;  %p192_p2 = scmp.ne.s32.totalorder %s115_s27, %s191_s28  ;;  %p197_p4 = scmp.lt.s32.totalorder %s191_s28, %s191_s28 }
  0x2a   :  { %v72_v10 = vmax.f32.f32 %v70_v7, %v71_v8 }
  0x2b   :  { %p198_p5 = por %p197_p4, %p196_p3 }
  0x2c   :  { %73 = vmax.xlane.f32.xlu1 %v72_v10 }
  0x2d   :  { %61 = vadd.xlane.f32.xlu0 %v60_v9  ;;  %p199_p6 = pnand %p198_p5, %p192_p2 }
  0xb6   :  { %v50_v11 = vpop.xlane.xlu0 %49 }
  0xb7   :  { %v51_v12 = vrot.slane %v50_v11, 4 }
  0xb9   :  { %v52_v13 = vadd.f32 %v51_v12, %v50_v11  ;;  %v74_v14 = vpop.xlane.xlu1 %73 }
  0xba   :  { %v62_v15 = vpop.xlane.xlu0 %61  ;;  %v75_v16 = vrot.slane %v74_v14, 4 }
  0xbb   :  { %v53_v17 = vrot.slane %v52_v13, 2  ;;  %v63_v18 = vrot.slane %v62_v15, 4 }
  0xbc   :  { %v76_v19 = vmax.f32 %v74_v14, %v75_v16 }
  0xbd   :  { %v64_v20 = vadd.f32 %v63_v18, %v62_v15  ;;  %v54_v21 = vadd.f32 %v53_v17, %v52_v13 }
  0xbe   :  { %v77_v22 = vrot.slane %v76_v19, 2 }
  0xbf   :  { %v65_v23 = vrot.slane %v64_v20, 2  ;;  %v55_v24 = vrot.slane %v54_v21, 1 }
  0xc0   :  { %v78_v25 = vmax.f32 %v76_v19, %v77_v22 }
  0xc1   :  { %v66_v26 = vadd.f32 %v65_v23, %v64_v20  ;;  %v56_v27 = vadd.f32 %v55_v24, %v54_v21 }
  0xc2   :  { %v79_v28 = vrot.slane %v78_v25, 1 }
  0xc3   :  { %127 = vpush %v56_v27  ;;  %v67_v29 = vrot.slane %v66_v26, 1 }
  0xc4   :  { %v80_v30 = vmax.f32 %v78_v25, %v79_v28 }
  0xc5   :  { %v68_v31 = vadd.f32 %v67_v29, %v66_v26 }
  0xc7   :  { %129 = vpush %v68_v31 }
  0xc8   :  { %131 = vpush %v80_v30 }
  0xf4   :  { %s128_s2 = spop %127 }
  0xf5   :  { %s82_s10 = smul.f32 0.00048828125, %s128_s2 }
  0xf7   :  { %s83_s11 = smul.f32 %s128_s2, %s82_s10 }
  0xf8   :  { %s130_s12 = spop %129 }
  0xf9   :  { %s84_s13 = ssub.f32 %s130_s12, %s83_s11  ;;  %s132_s17 = spop %131 }
  0xfa   :  { %v98_v33 = vstv %s132_s17 }
  0xfb   :  { %s85_s15 = smax.f32 %s223_s14, %s84_s13 }
  0xfc   :  { %s86_s16 = smul.f32 0.0004885198, %s85_s15 }
  0xfe   :  { %v88_v32 = vstv %s86_s16 }
  0xff   :  { %143 = vrsqrt.f32 %v88_v32  ;;  %vm91_vm0 = vcmp.eq.f32.partialorder %v88_v32, inf  ;;  %v94_v36 = vand.u32 2147483648, %v88_v32  ;;  %vm93_vm1 = vcmp.eq.f32.partialorder %v88_v32, 0.0 }
 0x100   :  { %145 = vrcp.f32 %v98_v33 }
 0x109   :  { %v144_v34 = vpop.eup %143 }
 0x10a   :  { %v90_v35 = vmul.f32 %v144_v34, %v88_v32  ;;  %v146_v39 = vpop.eup %145 }
 0x10c   :  { %v92_v37 = vsel %vm91_vm0, %v88_v32, %v90_v35 }
 0x10d   :  { %v95_v38 = vsel %vm93_vm1, %v94_v36, %v92_v37 }
 0x10e   :  { %133 = vpush %v95_v38 }
 0x10f   :  { %135 = vpush %v146_v39 }
 0x13f   :  { %s134_s18 = spop %133 }
 0x140   :  { %s97_s21 = smul.f32 %s134_s18, %s313_s0  ;;  %s136_s24 = spop %135 }
 0x142   :  { %s101_s25 = smul.f32 %s136_s24, %s97_s21 }
 0x144   :  { %v102_v40 = vstv %s101_s25 }
 0x145   :  { %v103_v41 = vmul.f32 %v102_v40, %v279_v2  ;;  %v104_v42 = vmul.f32 %v102_v40, %v287_v6 }
 0x147   :  { %v105_v43 = vadd.f32 %v103_v41, %v275_v0  ;;  %v106_v44 = vadd.f32 %v104_v42, %v277_v1 }
 0x149   :  { %107 = vst [vmem:[#allocation8] sm:$0xff] %v105_v43  ;;  %108 = vst [vmem:[#allocation8 + $0x8] sm:$0xff] %v106_v44 }
 0x14a   :  { %202 = shalt.err (!%p199_p6)
}
 0x14b   :  { %s203_s30 = scalar_lea.hbm %s316_s3, 256 }
 0x14c   :  { %p204_p7 = scmp.ne.s32.totalorder %s316_s3, %s203_s30  ;;  %p207_p8 = scmp.lt.u32.totalorder %s203_s30, %s316_s3 }
 0x14e   :  { %p209_p9 = pnand %p207_p8, %p204_p7 }
 0x150   :  { %212 = shalt.err (!%p209_p9)
}
 0x151   :  { %120 = dma.vmem_to_hbm [thread:$0]  %s115_s27, 256, %s316_s3, [#allocation5], %s220_s22, %s220_s22, %s221_s23  }
 0x152   :  { %217 = dma.done.wait [#allocation5], 256  }
 0x153   :  { %218 = vsyncadd [#allocation5], 4294967040 }
 0x154   :  { %124 = vsyncpa [#allocation4], 1 }
 0x155   :  { %125 = vsyncpa [#allocation7], 1 }
 0x156   :  { %126 = vsyncpa [#allocation5], 1 }

</bundles_post_ra>
